<compile_context>
chip_gen: v7x
topology: tpu7x:2x2x1
jax: 0.10.0
libtpu: 0.0.40
codegen_flags: <defaults>
</compile_context>

<pallas_src>
import jax
import jax.numpy as jnp
from jax.experimental import pallas as pl
from jax.experimental.pallas import tpu as pltpu

IN_DIM = 16 * 16   # 256
H1 = 128
H2 = 64


def mlp_kernel(x_ref, w1_ref, b1_ref, w2_ref, b2_ref, w3_ref, b3_ref, o_ref):
    # fc1 + ReLU   (bf16 inputs on the MXU, f32 accumulation)
    h1 = jnp.dot(x_ref[...], w1_ref[...], preferred_element_type=jnp.float32)
    h1 = jnp.maximum(h1 + b1_ref[...], 0.0)
    # fc2 + ReLU
    h2 = jnp.dot(h1.astype(jnp.bfloat16), w2_ref[...],
                 preferred_element_type=jnp.float32)
    h2 = jnp.maximum(h2 + b2_ref[...], 0.0)
    # fc3 (N=1): VPU multiply + lane reduction instead of a 1-lane MXU matmul;
    # b3 is a scalar in SMEM.
    out = jnp.sum(h2 * w3_ref[...], axis=-1, keepdims=True) + b3_ref[0, 0]
    o_ref[...] = out.astype(o_ref.dtype)


def _round_up(n, m):
    return ((n + m - 1) // m) * m


def velocity_prediction_net(x, params):
    """x: (B, 16, 16) (or anything with 256 trailing elems) -> (B, 1) float32."""
    w1, b1, w2, b2, w3, b3 = params
    x2d = x.reshape(-1, IN_DIM).astype(jnp.float32)   # x.view(-1, 256)
    B = x2d.shape[0]

    # Batch tile: >=512 rows amortizes per-grid-step overhead and gets near the
    # HBM roofline while only using TB*256*2B = 256 KiB of VMEM (bf16, TB=512).
    TB = 512 if B >= 512 else _round_up(B, 8)
    B_pad = _round_up(B, TB)
    if B_pad != B:
        x2d = jnp.pad(x2d, ((0, B_pad - B), (0, 0)))   # padded rows discarded below

    # bf16 matmul inputs halve the dominant HBM traffic on x; biases stay f32.
    x_bf = x2d.astype(jnp.bfloat16)
    w1_bf = w1.astype(jnp.bfloat16)
    w2_bf = w2.astype(jnp.bfloat16)
    w3_row = w3.reshape(1, H2).astype(jnp.float32)     # (1, 64) row for VPU reduce
    b3_sc = b3.reshape(1, 1).astype(jnp.float32)       # scalar -> SMEM

    grid = (B_pad // TB,)

    def resident(a):  # full-array block, same tile every step -> stays in VMEM
        return pl.BlockSpec(a.shape, lambda i: (0,) * a.ndim)

    weight_bytes = sum(int(a.size) * a.dtype.itemsize
                       for a in (w1_bf, b1, w2_bf, b2, w3_row, b3_sc))
    cost = pl.CostEstimate(
        flops=2 * B_pad * (IN_DIM * H1 + H1 * H2 + H2),
        bytes_accessed=B_pad * IN_DIM * 2 + B_pad * 4 + weight_bytes,
        transcendentals=0,
    )

    out = pl.pallas_call(
        mlp_kernel,
        out_shape=jax.ShapeDtypeStruct((B_pad, 1), jnp.float32),
        grid=grid,
        in_specs=[
            pl.BlockSpec((TB, IN_DIM), lambda i: (i, 0)),        # x: streamed tile
            resident(w1_bf), resident(b1),
            resident(w2_bf), resident(b2),
            resident(w3_row),
            pl.BlockSpec(memory_space=pltpu.MemorySpace.SMEM),   # b3 scalar
        ],
        out_specs=pl.BlockSpec((TB, 1), lambda i: (i, 0)),
        compiler_params=pltpu.CompilerParams(
            dimension_semantics=("parallel",)),
        cost_estimate=cost,
    )(x_bf, w1_bf, b1, w2_bf, b2, w3_row, b3_sc)

    return out[:B]


def init_params(key):
    """Deterministic init mimicking PyTorch's default Linear init
    (uniform(-1/sqrt(fan_in), 1/sqrt(fan_in)))."""
    dims = [(IN_DIM, H1), (H1, H2), (H2, 1)]
    params = []
    for fan_in, fan_out in dims:
        kw, kb, key = jax.random.split(key, 3)
        bound = 1.0 / (fan_in ** 0.5)
        w = jax.random.uniform(kw, (fan_in, fan_out), jnp.float32, -bound, bound)
        b = jax.random.uniform(kb, (1, fan_out), jnp.float32, -bound, bound)
        params += [w, b]
    return tuple(params)


def reference(x, params):
    w1, b1, w2, b2, w3, b3 = params
    h = x.reshape(-1, IN_DIM).astype(jnp.float32)
    h = jnp.maximum(h @ w1 + b1, 0.0)
    h = jnp.maximum(h @ w2 + b2, 0.0)
    return h @ w3 + b3


if __name__ == "__main__":
    key = jax.random.PRNGKey(0)
    kx, kp = jax.random.split(key)
    params = init_params(kp)
    # batch=2, 16x16 "image" input, consistent with view(-1, 16*16)
    x = jax.random.normal(kx, (2, 16, 16), jnp.float32)

    out = jax.block_until_ready(velocity_prediction_net(x, params))
    ref = reference(x, params)

    assert out.shape == (2, 1), out.shape
    # bf16 matmul inputs with f32 accumulation -> loosened tolerance vs f32 ref.
    assert jnp.allclose(out, ref, atol=2e-2, rtol=2e-2), (out, ref)
    print("KERNEL_OK")
</pallas_src>

<mosaic_0001>
module attributes {stable_mosaic.version = 11 : i64} {
  func.func @mlp_kernel(%arg0: i32, %arg1: memref<8x256xbf16, #tpu.memory_space<vmem>>, %arg2: memref<256x128xbf16, #tpu.memory_space<vmem>>, %arg3: memref<1x128xf32, #tpu.memory_space<vmem>>, %arg4: memref<128x64xbf16, #tpu.memory_space<vmem>>, %arg5: memref<1x64xf32, #tpu.memory_space<vmem>>, %arg6: memref<1x64xf32, #tpu.memory_space<vmem>>, %arg7: memref<1x1xf32, #tpu.memory_space<smem>>, %arg8: memref<8x1xf32, #tpu.memory_space<vmem>>) attributes {dimension_semantics = [#tpu.dimension_semantics<parallel>], iteration_bounds = array<i64: 1>, scalar_prefetch = 0 : i64, scratch_operands = 0 : i64, tpu.core_type = #tpu.core_type<tc>, window_params = [{transform_indices = @transform_0, window_bounds = array<i64: 8, 256>}, {pipeline_mode = #tpu.pipeline_mode<synchronous>, transform_indices = @transform_1, window_bounds = array<i64: 256, 128>}, {pipeline_mode = #tpu.pipeline_mode<synchronous>, transform_indices = @transform_2, window_bounds = array<i64: 1, 128>}, {pipeline_mode = #tpu.pipeline_mode<synchronous>, transform_indices = @transform_3, window_bounds = array<i64: 128, 64>}, {pipeline_mode = #tpu.pipeline_mode<synchronous>, transform_indices = @transform_4, window_bounds = array<i64: 1, 64>}, {pipeline_mode = #tpu.pipeline_mode<synchronous>, transform_indices = @transform_5, window_bounds = array<i64: 1, 64>}, {transform_indices = @transform_6, window_bounds = array<i64: 1, 1>}, {transform_indices = @transform_7, window_bounds = array<i64: 8, 1>}]} {
    %c0 = arith.constant 0 : index
    %c0_0 = arith.constant 0 : index
    %0 = vector.load %arg1[%c0, %c0_0] : memref<8x256xbf16, #tpu.memory_space<vmem>>, vector<8x256xbf16>
    %c0_1 = arith.constant 0 : index
    %c0_2 = arith.constant 0 : index
    %1 = vector.load %arg2[%c0_1, %c0_2] : memref<256x128xbf16, #tpu.memory_space<vmem>>, vector<256x128xbf16>
    %cst = arith.constant dense<0.000000e+00> : vector<8x128xf32>
    %2 = tpu.matmul %0, %1, %cst {dimension_numbers = #tpu.dot_dimension_numbers<[1], [0], [0], [1], [0, 0, 1, 1], [], []>} : vector<8x256xbf16>, vector<256x128xbf16>, vector<8x128xf32> -> vector<8x128xf32>
    %c0_3 = arith.constant 0 : index
    %c0_4 = arith.constant 0 : index
    %3 = vector.load %arg3[%c0_3, %c0_4] : memref<1x128xf32, #tpu.memory_space<vmem>>, vector<1x128xf32>
    %4 = vector.broadcast %3 : vector<1x128xf32> to vector<8x128xf32>
    %5 = arith.addf %2, %4 : vector<8x128xf32>
    %cst_5 = arith.constant 0.000000e+00 : f32
    %6 = vector.broadcast %cst_5 : f32 to vector<8x128xf32>
    %7 = arith.maximumf %5, %6 : vector<8x128xf32>
    %8 = arith.truncf %7 : vector<8x128xf32> to vector<8x128xbf16>
    %c0_6 = arith.constant 0 : index
    %c0_7 = arith.constant 0 : index
    %9 = vector.load %arg4[%c0_6, %c0_7] : memref<128x64xbf16, #tpu.memory_space<vmem>>, vector<128x64xbf16>
    %cst_8 = arith.constant dense<0.000000e+00> : vector<8x64xf32>
    %10 = tpu.matmul %8, %9, %cst_8 {dimension_numbers = #tpu.dot_dimension_numbers<[1], [0], [0], [1], [0, 0, 1, 1], [], []>} : vector<8x128xbf16>, vector<128x64xbf16>, vector<8x64xf32> -> vector<8x64xf32>
    %c0_9 = arith.constant 0 : index
    %c0_10 = arith.constant 0 : index
    %11 = vector.load %arg5[%c0_9, %c0_10] : memref<1x64xf32, #tpu.memory_space<vmem>>, vector<1x64xf32>
    %12 = vector.broadcast %11 : vector<1x64xf32> to vector<8x64xf32>
    %13 = arith.addf %10, %12 : vector<8x64xf32>
    %cst_11 = arith.constant 0.000000e+00 : f32
    %14 = vector.broadcast %cst_11 : f32 to vector<8x64xf32>
    %15 = arith.maximumf %13, %14 : vector<8x64xf32>
    %c0_12 = arith.constant 0 : index
    %c0_13 = arith.constant 0 : index
    %16 = vector.load %arg6[%c0_12, %c0_13] : memref<1x64xf32, #tpu.memory_space<vmem>>, vector<1x64xf32>
    %17 = vector.broadcast %16 : vector<1x64xf32> to vector<8x64xf32>
    %18 = arith.mulf %15, %17 : vector<8x64xf32>
    %cst_14 = arith.constant dense<0.000000e+00> : vector<8xf32>
    %19 = vector.multi_reduction <add>, %18, %cst_14 [1] : vector<8x64xf32> to vector<8xf32>
    %20 = vector.shape_cast %19 : vector<8xf32> to vector<8x1xf32>
    %c0_15 = arith.constant 0 : index
    %c0_16 = arith.constant 0 : index
    %21 = memref.load %arg7[%c0_15, %c0_16] : memref<1x1xf32, #tpu.memory_space<smem>>
    %22 = vector.broadcast %21 : f32 to vector<8x1xf32>
    %23 = arith.addf %20, %22 : vector<8x1xf32>
    %c0_17 = arith.constant 0 : index
    %c0_18 = arith.constant 0 : index
    %24 = vector.load %arg8[%c0_17, %c0_18] : memref<8x1xf32, #tpu.memory_space<vmem>>, vector<8x1xf32>
    tpu.vector_store %arg8[%c0_17, %c0_18], %23 {strides = array<i32>} : memref<8x1xf32, #tpu.memory_space<vmem>>, vector<8x1xf32>,
    return
  }
  func.func @transform_0(%arg0: i32) -> (i32, i32) {
    %c0_i32 = arith.constant 0 : i32
    %c0_i32_0 = arith.constant 0 : i32
    return %arg0, %c0_i32 : i32, i32
  }
  func.func @transform_1(%arg0: i32) -> (i32, i32) {
    %c0_i32 = arith.constant 0 : i32
    %c0_i32_0 = arith.constant 0 : i32
    %c0_i32_1 = arith.constant 0 : i32
    return %c0_i32, %c0_i32_0 : i32, i32
  }
  func.func @transform_2(%arg0: i32) -> (i32, i32) {
    %c0_i32 = arith.constant 0 : i32
    %c0_i32_0 = arith.constant 0 : i32
    %c0_i32_1 = arith.constant 0 : i32
    return %c0_i32, %c0_i32_0 : i32, i32
  }
  func.func @transform_3(%arg0: i32) -> (i32, i32) {
    %c0_i32 = arith.constant 0 : i32
    %c0_i32_0 = arith.constant 0 : i32
    %c0_i32_1 = arith.constant 0 : i32
    return %c0_i32, %c0_i32_0 : i32, i32
  }
  func.func @transform_4(%arg0: i32) -> (i32, i32) {
    %c0_i32 = arith.constant 0 : i32
    %c0_i32_0 = arith.constant 0 : i32
    %c0_i32_1 = arith.constant 0 : i32
    return %c0_i32, %c0_i32_0 : i32, i32
  }
  func.func @transform_5(%arg0: i32) -> (i32, i32) {
    %c0_i32 = arith.constant 0 : i32
    %c0_i32_0 = arith.constant 0 : i32
    %c0_i32_1 = arith.constant 0 : i32
    return %c0_i32, %c0_i32_0 : i32, i32
  }
  func.func @transform_6(%arg0: i32) -> (i32, i32) {
    %c0_i32 = arith.constant 0 : i32
    %c0_i32_0 = arith.constant 0 : i32
    %c0_i32_1 = arith.constant 0 : i32
    return %c0_i32, %c0_i32_0 : i32, i32
  }
  func.func @transform_7(%arg0: i32) -> (i32, i32) {
    %c0_i32 = arith.constant 0 : i32
    %c0_i32_0 = arith.constant 0 : i32
    return %arg0, %c0_i32 : i32, i32
  }
}

</mosaic_0001>

<bundles_post_ra>
// kernel: tpu_custom_call.1
= control target key start
LH: loop header
LB: loop body
LE: loop exit
PB: predicated region body
PF: predicated region fallthrough
CT: control target
= control target key end

     0   :  { %13 = vsyncpa [#allocation4], 0  ;;  %s496_s24 = smov [#allocation3]   ;;  %s604_s0 = inlined_call_operand.vmem [shape: bf16[8,256], index: 0, kind: input, shape index: {}]   ;;  %s605_s1 = inlined_call_operand.hbm [shape: bf16[256,128], index: 1, kind: input, shape index: {}]   ;;  %s606_s2 = inlined_call_operand.vmem [shape: f32[1,128], index: 2, kind: input, shape index: {}]   ;;  %s607_s3 = inlined_call_operand.vmem [shape: bf16[128,64], index: 3, kind: input, shape index: {}]   ;;  %s608_s4 = inlined_call_operand.vmem [shape: f32[1,64], index: 4, kind: input, shape index: {}]   ;;  %s609_s5 = inlined_call_operand.vmem [shape: f32[1,64], index: 5, kind: input, shape index: {}]   ;;  %s610_s6 = inlined_call_operand.<no memory space> [shape: f32[1,1], index: 6, kind: input, shape index: {}]   ;;  %s611_s7 = inlined_call_operand.vmem [shape: f32[8,1], index: 7, kind: output, shape index: {}]  }
   0x1   :  { %s21_s25 = sshll.u32 %s496_s24, 4  ;;  %s472_s28 = scalar_lea.hbm %s605_s1, 2048  ;;  %s22_s25 = int_to_ptr.vmem [resolvable:$true] %s21_s25 }
   0x2   :  { %p473_p0 = scmp.ne.s32.totalorder %s605_s1, %s472_s28  ;;  %p476_p1 = scmp.lt.u32.totalorder %s472_s28, %s605_s1 }
   0x4   :  { %p478_p2 = pnand %p476_p1, %p473_p0 }
   0x6   :  { %481 = shalt.err (!%p478_p2)
}
   0x7   :  { %s482_s10 = scalar_lea.vmem %s22_s25, 2048  ;;  %p487_p4 = scmp.lt.s32.totalorder %s22_s25, %s22_s25 }
   0x8   :  { %p483_p3 = scmp.ne.s32.totalorder %s22_s25, %s482_s10  ;;  %p488_p5 = scmp.lt.s32.totalorder %s482_s10, %s482_s10 }
   0xa   :  { %p489_p6 = por %p488_p5, %p487_p4 }
   0xc   :  { %p490_p7 = pnand %p489_p6, %p483_p3 }
   0xe   :  { %493 = shalt.err (!%p490_p7)
}
   0xf   :  { %s497_s11 = smov 64   ;;  %s498_s12 = smov 4  }
  0x10   :  { %27 = dma.hbm_to_vmem [thread:$0]  %s605_s1, 2048, %s22_s25, [#allocation4], %s497_s11, %s497_s11, %s498_s12  }
  0x11   :  { %494 = dma.done.wait [#allocation4], 2048  }
  0x12   :  { %495 = vsyncadd [#allocation4], 4294965248  ;;  %v499_v0 = vmov 0.0   ;;  %v446_v1 = vld [vmem:[#allocation3 + $0x40] sm:$0xff]   ;;  %v448_v3 = vld [vmem:[#allocation3 + $0x48] sm:$0xff]   ;;  %vm500_vm0 = vmmov 0   ;;  %v352_v47 = vstv %s610_s6 }
  0x13   :  { %421 = vmatprep.subr.bf16.mxu1 %v499_v0  ;;  %v447_v2 = vld [vmem:[#allocation3] sm:$0xff]   ;;  %390 = vmatprep.subr.bf16.mxu0 %v446_v1  ;;  %v449_v4 = vld [vmem:[#allocation3 + $0x8] sm:$0xff]   ;;  %v450_v5 = vld [vmem:[#allocation3 + $0x50] sm:$0xff]   ;;  %vm347_vm1 = vcmask 523264   ;;  %vm354_vm2 = vcmask 7168  }
  0x14   :  { %391 = vmatpush3.bf16.msra.mxu0 %v447_v2  ;;  %v451_v6 = vld [vmem:[#allocation3 + $0x10] sm:$0xff]   ;;  %v452_v7 = vld [vmem:[#allocation3 + $0x58] sm:$0xff]   ;;  %v454_v9 = vld [vmem:[#allocation3 + $0x60] sm:$0xff]   ;;  %437 = vmatprep.mubr.msk.bf16.mxu1 %vm500_vm0, %v499_v0 }
  0x15   :  { %392 = vmatprep.subr.bf16.mxu0 %v448_v3  ;;  %v453_v8 = vld [vmem:[#allocation3 + $0x18] sm:$0xff]   ;;  %v455_v10 = vld [vmem:[#allocation3 + $0x20] sm:$0xff]   ;;  %v456_v11 = vld [vmem:[#allocation3 + $0x68] sm:$0xff]  }
  0x16   :  { %v42_v12 = vld [vmem:[%s604_s0] sm:$0xff]  ;;  %v457_v15 = vld [vmem:[#allocation3 + $0x28] sm:$0xff]   ;;  %v458_v16 = vld [vmem:[#allocation3 + $0x70] sm:$0xff]  }
  0x17   :  { %v363_v13 = vcombine.high %v42_v12, %v42_v12  ;;  %v464_v14 = vld [vmem:[%s607_s3] sm:$0xff]   ;;  %v465_v17 = vld [vmem:[%s607_s3 + $0x8] sm:$0xff]   ;;  %v459_v18 = vld [vmem:[#allocation3 + $0x30] sm:$0xff]   ;;  %v362_v23 = vcombine.low %v42_v12, %v42_v12 }
  0x18   :  { %393 = vmatpush3.bf16.msra.mxu0 %v449_v4  ;;  %422 = vmatpush3.bf16.msra.mxu1 %v464_v14  ;;  %v460_v19 = vld [vmem:[#allocation3 + $0x78] sm:$0xff]   ;;  %v466_v20 = vld [vmem:[%s607_s3 + $0x10] sm:$0xff]   ;;  %v468_v24 = vld [vmem:[%s607_s3 + $0x20] sm:$0xff]  }
  0x19   :  { %394 = vmatprep.subr.bf16.mxu0 %v450_v5  ;;  %217 = vmatprep.mubr.bf16.mxu0 %v363_v13  ;;  %v461_v21 = vld [vmem:[#allocation3 + $0x38] sm:$0xff]   ;;  %v469_v25 = vld [vmem:[%s607_s3 + $0x28] sm:$0xff]   ;;  %v470_v26 = vld [vmem:[%s607_s3 + $0x30] sm:$0xff]  }
  0x1a   :  { %423 = vmatprep.subr.bf16.mxu1 %v499_v0  ;;  %v467_v22 = vld [vmem:[%s607_s3 + $0x18] sm:$0xff]   ;;  %v361_v29 = vld [vmem:[%s606_s2] ss:$0 sm:$0xff] }
  0x1b   :  { %v471_v27 = vld [vmem:[%s607_s3 + $0x38] sm:$0xff]   ;;  %v380_v37 = vld [vmem:[%s608_s4] ss:$0 sm:$0xff] }
  0x1c   :  { %395 = vmatpush3.bf16.msra.mxu0 %v451_v6  ;;  %424 = vmatpush3.bf16.msra.mxu1 %v465_v17  ;;  %v389_v42 = vld [vmem:[%s609_s5] ss:$0 sm:$0xff] }
  0x1d   :  { %396 = vmatprep.subr.bf16.mxu0 %v452_v7  ;;  %425 = vmatprep.subr.bf16.mxu1 %v499_v0 }
  0x20   :  { %397 = vmatpush3.bf16.msra.mxu0 %v453_v8  ;;  %426 = vmatpush3.bf16.msra.mxu1 %v466_v20 }
  0x21   :  { %398 = vmatprep.subr.bf16.mxu0 %v454_v9  ;;  %427 = vmatprep.subr.bf16.mxu1 %v499_v0 }
  0x24   :  { %399 = vmatpush3.bf16.msra.mxu0 %v455_v10  ;;  %428 = vmatpush3.bf16.msra.mxu1 %v467_v22 }
  0x25   :  { %400 = vmatprep.subr.bf16.mxu0 %v456_v11  ;;  %429 = vmatprep.subr.bf16.mxu1 %v499_v0 }
  0x28   :  { %401 = vmatpush3.bf16.msra.mxu0 %v457_v15  ;;  %430 = vmatpush3.bf16.msra.mxu1 %v468_v24 }
  0x29   :  { %402 = vmatprep.subr.bf16.mxu0 %v458_v16  ;;  %431 = vmatprep.subr.bf16.mxu1 %v499_v0 }
  0x2c   :  { %403 = vmatpush3.bf16.msra.mxu0 %v459_v18  ;;  %432 = vmatpush3.bf16.msra.mxu1 %v469_v25 }
  0x2d   :  { %404 = vmatprep.subr.bf16.mxu0 %v460_v19  ;;  %433 = vmatprep.subr.bf16.mxu1 %v499_v0 }
  0x30   :  { %405 = vmatpush3.bf16.msra.mxu0 %v461_v21  ;;  %434 = vmatpush3.bf16.msra.mxu1 %v470_v26 }
  0x31   :  { %435 = vmatprep.subr.bf16.mxu1 %v499_v0 }
  0x33   :  { %218 = vmatmul.mubr.bf16.vlgmr.msra.gmra.mrb[0].mxu0 %v362_v23 }
  0x34   :  { %436 = vmatpush3.bf16.msra.mxu1 %v471_v27 }
 0x106   :  { %v406_v28 = vpop.f32.mrb[0].mxu0 }
 0x107   :  { %v407_v30 = vpop.f32.mrb[1].mxu0 }
 0x108   :  { %v408_v31 = vadd.f32 %v407_v30, %v406_v28  ;;  %v409_v32 = vpop.f32.mrb[2].mxu0 }
 0x109   :  { %v410_v33 = vpop.f32.mrb[3].mxu0 }
 0x10a   :  { %v220_v34 = vadd.f32 %v408_v31, %v361_v29 }
 0x10c   :  { %v225_v35 = vmax.f32 %v220_v34, 0.0 }
 0x10e   :  { %v226_v36 = vpack.c.bf16 %v225_v35, %v225_v35 }
 0x110   :  { %438 = vmatmul.mubr.bf16.vlgmr.msra.gmra.mrb[0].mxu1 %v226_v36 }
 0x1e3   :  { %v332_v38 = vpop.f32.mrb[0].mxu1 }
 0x1e4   :  { %v333_v39 = vadd.f32 %v380_v37, %v332_v38  ;;  %v439_v40 = vpop.f32.mrb[1].mxu1 }
 0x1e5   :  { %v335_v41 = vpop.f32.mrb[2].mxu1 }
 0x1e6   :  { %v338_v43 = vmax.f32 %v333_v39, 0.0  ;;  %v440_v44 = vpop.f32.mrb[3].mxu1 }
 0x1e8   :  { %v346_v45 = vmul.f32 %v389_v42, %v338_v43 }
 0x1ea   :  { %v348_v46 = vsel %vm347_vm1, %v346_v45, 0.0 }
 0x1eb   :  { %349 = vadd.xlane.f32.xlu0 %v348_v46 }
 0x278   :  { %v350_v48 = vpop.xlane.xlu0 %349 }
 0x279   :  { %v353_v49 = vadd.f32 %v352_v47, %v350_v48 }
 0x27b   :  { %355 = vst.msk [vmem:[%s611_s7] sm:$0xff] %vm354_vm2, %v353_v49 }
 0x27c   :  { %360 = vsyncpa [#allocation4], 1 }

</bundles_post_ra>
